<compile_context>
chip_gen: v6e
topology: v6e:2x2x1
jax: 0.10.0
libtpu: 0.0.40
codegen_flags: <defaults>
</compile_context>

<pallas_src>
import jax
import jax.numpy as jnp
from jax.experimental import pallas as pl
from jax.experimental.pallas import tpu as pltpu

BN_EPS = 1e-5
LANES = 128  # pad the class dim to a full lane width (dense, unmasked vst)


def net2_kernel(x_ref, w1_ref, w2_ref, w3_ref, b_ref, o_ref):
    hidden = w1_ref.shape[1]
    padded_classes = w3_ref.shape[1]

    # biases stay f32 (only the MXU runs bf16; elementwise kept f32 for v5e)
    b1 = b_ref[0:1, :hidden]
    b2 = b_ref[1:2, :hidden]
    b3 = b_ref[2:3, :padded_classes]   # explicit slice: slab may be wider

    # x arrives f32; cast to bf16 here (in-kernel cast instead of a separate
    # wrapper-side XLA op — the VPU work hides under the MXU).
    x = x_ref[...].astype(jnp.bfloat16)

    # fc1 (eval-mode bn1 already folded into w1/b1) -> relu
    h = jnp.dot(x, w1_ref[...], preferred_element_type=jnp.float32) + b1
    h = jnp.maximum(h, 0.0)

    # dropout(p=0.2): identity in eval mode
    # TODO(synk): training-mode dropout (pltpu.prng_random_bits mask) and
    #             batch-statistics BatchNorm are not implemented here.

    # fc2 (same bn1 fold — the reference module applies bn1 after fc2) -> relu
    h = jnp.dot(h.astype(jnp.bfloat16), w2_ref[...],
                preferred_element_type=jnp.float32) + b2
    h = jnp.maximum(h, 0.0)

    # fc3 (classes padded to 128 lanes -> dense vst, no masked partial stores)
    o = jnp.dot(h.astype(jnp.bfloat16), w3_ref[...],
                preferred_element_type=jnp.float32) + b3
    o_ref[...] = o.astype(o_ref.dtype)


def _round_up(n, m):
    return ((n + m - 1) // m) * m


def _choose_tile(batch, max_tile=1024):
    """Pick the per-step batch tile.

    - batch <= 256: a single grid step covering the whole (8-row-aligned)
      batch — the net is step/launch-overhead bound, so fewest steps wins.
    - batch  > 256: tiles are multiples of 256 (v6e/v7x MXU is 256 rows per
      push; v5e's 128-wide MXU just takes two pushes), with >= 2 grid steps so
      dimension_semantics=("parallel",) can put half the batch on each v7x
      TensorCore, capped at max_tile rows to bound per-step VMEM (<~1.5 MiB).
    """
    if batch <= 256:
        return _round_up(batch, 8)
    padded = _round_up(batch, 256)
    n_steps = max(2, pl.cdiv(padded, max_tile))
    return _round_up(pl.cdiv(padded, n_steps), 256)


def net2_forward(x, params, *, tile_b=None, out_dtype=jnp.float32,
                 trim_classes=True):
    w1, w2, w3, bias = params["w1"], params["w2"], params["w3"], params["bias"]
    num_classes = params["num_classes"]

    batch, input_dim = x.shape
    hidden = w1.shape[1]
    padded_classes = w3.shape[1]
    slab_rows, slab_w = bias.shape

    if tile_b is None:
        tile_b = _choose_tile(batch)
    grid = (pl.cdiv(batch, tile_b),)   # ragged final block is masked by Pallas

    out = pl.pallas_call(
        net2_kernel,
        out_shape=jax.ShapeDtypeStruct((batch, padded_classes), out_dtype),
        grid=grid,
        in_specs=[
            # activations: pipelined per-tile DMA (f32 in; bf16 cast in-kernel)
            pl.BlockSpec((tile_b, input_dim), lambda i: (i, 0)),
            # weights / bias slab: constant index_map -> fetched once and kept
            # VMEM-resident across grid steps.
            # NOTE: still double-buffered by default. Irrelevant at hidden=128
            # (~150 KiB doubled); if hidden_dim is ever scaled to multi-k, add
            # pipeline_mode=pl.Buffered(1) or tile K/N so the 2x-resident
            # weights stay inside v7x's 64 MiB VMEM.
            pl.BlockSpec((input_dim, hidden), lambda i: (0, 0)),
            pl.BlockSpec((hidden, hidden), lambda i: (0, 0)),
            pl.BlockSpec((hidden, padded_classes), lambda i: (0, 0)),
            pl.BlockSpec((slab_rows, slab_w), lambda i: (0, 0)),
        ],
        out_specs=pl.BlockSpec((tile_b, padded_classes), lambda i: (i, 0)),
        compiler_params=pltpu.CompilerParams(
            dimension_semantics=("parallel",)),  # 2 TCs on v7x; no-op otherwise
    )(x, w1, w2, w3, bias)

    if trim_classes:
        # One small wrapper-side slice; pass trim_classes=False to get the
        # 128-lane padded logits (padded lanes are exact zeros + b3 padding=0)
        # and let the consumer slice/fuse lazily instead.
        return out[:, :num_classes]
    return out


def init_params(key, input_dim, hidden_dim=128, num_classes=38):
    """PyTorch-style uniform(-1/sqrt(fan_in), 1/sqrt(fan_in)) init, with
    eval-mode bn1 folded into fc1/fc2 (in f32) and weights cast to bf16."""
    ks = jax.random.split(key, 6)

    def linear(kw, kb, fan_in, fan_out):
        bound = 1.0 / float(fan_in) ** 0.5
        w = jax.random.uniform(kw, (fan_in, fan_out), jnp.float32, -bound, bound)
        b = jax.random.uniform(kb, (fan_out,), jnp.float32, -bound, bound)
        return w, b

    w1, b1 = linear(ks[0], ks[1], input_dim, hidden_dim)
    w2, b2 = linear(ks[2], ks[3], hidden_dim, hidden_dim)
    w3, b3 = linear(ks[4], ks[5], hidden_dim, num_classes)

    # BatchNorm1d(hidden_dim) defaults (eval): gamma=1, beta=0, mean=0, var=1
    gamma = jnp.ones((hidden_dim,), jnp.float32)
    beta = jnp.zeros((hidden_dim,), jnp.float32)
    running_mean = jnp.zeros((hidden_dim,), jnp.float32)
    running_var = jnp.ones((hidden_dim,), jnp.float32)

    # Fold bn1 into fc1 and fc2 (the reference applies bn1 after both), in f32,
    # BEFORE any bf16 cast. Intentionally bn1 twice — do NOT "fix" to bn2.
    scale = gamma * jax.lax.rsqrt(running_var + BN_EPS)   # [H]
    shift = beta - running_mean * scale                   # [H]
    w1 = w1 * scale[None, :]
    b1 = b1 * scale + shift
    w2 = w2 * scale[None, :]
    b2 = b2 * scale + shift

    # Pad class dim to a full lane width for a dense output store.
    padded_classes = ((num_classes + LANES - 1) // LANES) * LANES
    w3p = jnp.zeros((hidden_dim, padded_classes), jnp.float32)
    w3p = w3p.at[:, :num_classes].set(w3)
    b3p = jnp.zeros((padded_classes,), jnp.float32).at[:num_classes].set(b3)

    # Pack the three bias rows into one f32 slab (single DMA descriptor).
    slab_w = max(hidden_dim, padded_classes)
    bias = jnp.zeros((3, slab_w), jnp.float32)
    bias = bias.at[0, :hidden_dim].set(b1)
    bias = bias.at[1, :hidden_dim].set(b2)
    bias = bias.at[2, :padded_classes].set(b3p)

    return dict(
        w1=w1.astype(jnp.bfloat16),
        w2=w2.astype(jnp.bfloat16),
        w3=w3p.astype(jnp.bfloat16),
        bias=bias,
        num_classes=num_classes,
    )


def net2_ref(x, params):
    """Pure-JAX reference using the same (folded, bf16) weights, f32 math,
    with the same quantization points as the kernel."""
    w1 = params["w1"].astype(jnp.float32)
    w2 = params["w2"].astype(jnp.float32)
    w3 = params["w3"].astype(jnp.float32)
    bias = params["bias"]
    hidden = w1.shape[1]
    padded_classes = w3.shape[1]
    xb = x.astype(jnp.bfloat16).astype(jnp.float32)
    h = jnp.maximum(xb @ w1 + bias[0, :hidden], 0.0)
    h = jnp.maximum(h.astype(jnp.bfloat16).astype(jnp.float32) @ w2
                    + bias[1, :hidden], 0.0)
    o = (h.astype(jnp.bfloat16).astype(jnp.float32) @ w3
         + bias[2, :padded_classes])
    return o[:, :params["num_classes"]]


if __name__ == "__main__":
    batch, input_dim, hidden_dim, num_classes = 64, 32, 128, 38

    key = jax.random.PRNGKey(0)
    kx, kp = jax.random.split(key)
    x = jax.random.normal(kx, (batch, input_dim), jnp.float32)
    params = init_params(kp, input_dim, hidden_dim, num_classes)

    out = net2_forward(x, params)          # auto tile: whole batch, 1 grid step
    jax.block_until_ready(out)

    assert out.shape == (batch, num_classes)
    ref = net2_ref(x, params)
    assert jnp.allclose(out, ref, atol=5e-2, rtol=5e-2)
    print("KERNEL_OK")
</pallas_src>

<mosaic_0001>
module attributes {stable_mosaic.version = 11 : i64} {
  func.func @net2_kernel(%arg0: i32, %arg1: memref<64x32xf32, #tpu.memory_space<vmem>>, %arg2: memref<32x128xbf16, #tpu.memory_space<vmem>>, %arg3: memref<128x128xbf16, #tpu.memory_space<vmem>>, %arg4: memref<128x128xbf16, #tpu.memory_space<vmem>>, %arg5: memref<3x128xf32, #tpu.memory_space<vmem>>, %arg6: memref<64x128xf32, #tpu.memory_space<vmem>>) attributes {dimension_semantics = [#tpu.dimension_semantics<parallel>], iteration_bounds = array<i64: 1>, scalar_prefetch = 0 : i64, scratch_operands = 0 : i64, tpu.core_type = #tpu.core_type<tc>, window_params = [{transform_indices = @transform_0, window_bounds = array<i64: 64, 32>}, {pipeline_mode = #tpu.pipeline_mode<synchronous>, transform_indices = @transform_1, window_bounds = array<i64: 32, 128>}, {pipeline_mode = #tpu.pipeline_mode<synchronous>, transform_indices = @transform_2, window_bounds = array<i64: 128, 128>}, {pipeline_mode = #tpu.pipeline_mode<synchronous>, transform_indices = @transform_3, window_bounds = array<i64: 128, 128>}, {pipeline_mode = #tpu.pipeline_mode<synchronous>, transform_indices = @transform_4, window_bounds = array<i64: 3, 128>}, {transform_indices = @transform_5, window_bounds = array<i64: 64, 128>}]} {
    %c0 = arith.constant 0 : index
    %c0_0 = arith.constant 0 : index
    %0 = vector.load %arg5[%c0, %c0_0] : memref<3x128xf32, #tpu.memory_space<vmem>>, vector<1x128xf32>
    %c1 = arith.constant 1 : index
    %c0_1 = arith.constant 0 : index
    %1 = vector.load %arg5[%c1, %c0_1] : memref<3x128xf32, #tpu.memory_space<vmem>>, vector<1x128xf32>
    %c2 = arith.constant 2 : index
    %c0_2 = arith.constant 0 : index
    %2 = vector.load %arg5[%c2, %c0_2] : memref<3x128xf32, #tpu.memory_space<vmem>>, vector<1x128xf32>
    %c0_3 = arith.constant 0 : index
    %c0_4 = arith.constant 0 : index
    %3 = vector.load %arg1[%c0_3, %c0_4] : memref<64x32xf32, #tpu.memory_space<vmem>>, vector<64x32xf32>
    %4 = arith.truncf %3 : vector<64x32xf32> to vector<64x32xbf16>
    %c0_5 = arith.constant 0 : index
    %c0_6 = arith.constant 0 : index
    %5 = vector.load %arg2[%c0_5, %c0_6] : memref<32x128xbf16, #tpu.memory_space<vmem>>, vector<32x128xbf16>
    %cst = arith.constant dense<0.000000e+00> : vector<64x128xf32>
    %6 = tpu.matmul %4, %5, %cst {dimension_numbers = #tpu.dot_dimension_numbers<[1], [0], [0], [1], [0, 0, 1, 1], [], []>} : vector<64x32xbf16>, vector<32x128xbf16>, vector<64x128xf32> -> vector<64x128xf32>
    %7 = vector.broadcast %0 : vector<1x128xf32> to vector<64x128xf32>
    %8 = arith.addf %6, %7 : vector<64x128xf32>
    %cst_7 = arith.constant 0.000000e+00 : f32
    %9 = vector.broadcast %cst_7 : f32 to vector<64x128xf32>
    %10 = arith.maximumf %8, %9 : vector<64x128xf32>
    %11 = arith.truncf %10 : vector<64x128xf32> to vector<64x128xbf16>
    %c0_8 = arith.constant 0 : index
    %c0_9 = arith.constant 0 : index
    %12 = vector.load %arg3[%c0_8, %c0_9] : memref<128x128xbf16, #tpu.memory_space<vmem>>, vector<128x128xbf16>
    %cst_10 = arith.constant dense<0.000000e+00> : vector<64x128xf32>
    %13 = tpu.matmul %11, %12, %cst_10 {dimension_numbers = #tpu.dot_dimension_numbers<[1], [0], [0], [1], [0, 0, 1, 1], [], []>} : vector<64x128xbf16>, vector<128x128xbf16>, vector<64x128xf32> -> vector<64x128xf32>
    %14 = vector.broadcast %1 : vector<1x128xf32> to vector<64x128xf32>
    %15 = arith.addf %13, %14 : vector<64x128xf32>
    %cst_11 = arith.constant 0.000000e+00 : f32
    %16 = vector.broadcast %cst_11 : f32 to vector<64x128xf32>
    %17 = arith.maximumf %15, %16 : vector<64x128xf32>
    %18 = arith.truncf %17 : vector<64x128xf32> to vector<64x128xbf16>
    %c0_12 = arith.constant 0 : index
    %c0_13 = arith.constant 0 : index
    %19 = vector.load %arg4[%c0_12, %c0_13] : memref<128x128xbf16, #tpu.memory_space<vmem>>, vector<128x128xbf16>
    %cst_14 = arith.constant dense<0.000000e+00> : vector<64x128xf32>
    %20 = tpu.matmul %18, %19, %cst_14 {dimension_numbers = #tpu.dot_dimension_numbers<[1], [0], [0], [1], [0, 0, 1, 1], [], []>} : vector<64x128xbf16>, vector<128x128xbf16>, vector<64x128xf32> -> vector<64x128xf32>
    %21 = vector.broadcast %2 : vector<1x128xf32> to vector<64x128xf32>
    %22 = arith.addf %20, %21 : vector<64x128xf32>
    %c0_15 = arith.constant 0 : index
    %c0_16 = arith.constant 0 : index
    %23 = vector.load %arg6[%c0_15, %c0_16] : memref<64x128xf32, #tpu.memory_space<vmem>>, vector<64x128xf32>
    tpu.vector_store %arg6[%c0_15, %c0_16], %22 {strides = array<i32>} : memref<64x128xf32, #tpu.memory_space<vmem>>, vector<64x128xf32>,
    return
  }
  func.func @transform_0(%arg0: i32) -> (i32, i32) {
    %c0_i32 = arith.constant 0 : i32
    %c0_i32_0 = arith.constant 0 : i32
    return %arg0, %c0_i32 : i32, i32
  }
  func.func @transform_1(%arg0: i32) -> (i32, i32) {
    %c0_i32 = arith.constant 0 : i32
    %c0_i32_0 = arith.constant 0 : i32
    %c0_i32_1 = arith.constant 0 : i32
    return %c0_i32, %c0_i32_0 : i32, i32
  }
  func.func @transform_2(%arg0: i32) -> (i32, i32) {
    %c0_i32 = arith.constant 0 : i32
    %c0_i32_0 = arith.constant 0 : i32
    %c0_i32_1 = arith.constant 0 : i32
    return %c0_i32, %c0_i32_0 : i32, i32
  }
  func.func @transform_3(%arg0: i32) -> (i32, i32) {
    %c0_i32 = arith.constant 0 : i32
    %c0_i32_0 = arith.constant 0 : i32
    %c0_i32_1 = arith.constant 0 : i32
    return %c0_i32, %c0_i32_0 : i32, i32
  }
  func.func @transform_4(%arg0: i32) -> (i32, i32) {
    %c0_i32 = arith.constant 0 : i32
    %c0_i32_0 = arith.constant 0 : i32
    %c0_i32_1 = arith.constant 0 : i32
    return %c0_i32, %c0_i32_0 : i32, i32
  }
  func.func @transform_5(%arg0: i32) -> (i32, i32) {
    %c0_i32 = arith.constant 0 : i32
    %c0_i32_0 = arith.constant 0 : i32
    return %arg0, %c0_i32 : i32, i32
  }
}

</mosaic_0001>

<bundles_post_ra>
// kernel: tpu_custom_call.1
= control target key start
LH: loop header
LB: loop body
LE: loop exit
PB: predicated region body
PF: predicated region fallthrough
CT: control target
= control target key end

     0   :  { %10 = vsyncpa [#allocation3], 0  ;;  %s756_s0 = inlined_call_operand.vmem [shape: f32[64,32], index: 0, kind: input, shape index: {}]   ;;  %s757_s1 = inlined_call_operand.vmem [shape: bf16[32,128], index: 1, kind: input, shape index: {}]   ;;  %s758_s2 = inlined_call_operand.vmem [shape: bf16[128,128], index: 2, kind: input, shape index: {}]   ;;  %s759_s3 = inlined_call_operand.hbm [shape: bf16[128,128], index: 3, kind: input, shape index: {}]   ;;  %s760_s4 = inlined_call_operand.vmem [shape: f32[3,128], index: 4, kind: input, shape index: {}]   ;;  %s761_s5 = inlined_call_operand.hbm [shape: f32[64,128], index: 5, kind: output, shape index: {}]  }
   0x1   :  { %11 = vsyncpa [#allocation4], 0  ;;  %s647_s18 = smov [#allocation2]  }
   0x2   :  { %s23_s19 = sshll.u32 %s647_s18, 4  ;;  %s24_s19 = int_to_ptr.vmem [resolvable:$true] %s23_s19 }
   0x3   :  { %s611_s20 = scalar_lea.vmem %s24_s19, 1024  ;;  %p616_p1 = scmp.lt.s32.totalorder %s24_s19, %s24_s19 }
   0x4   :  { %p612_p0 = scmp.ne.s32.totalorder %s24_s19, %s611_s20  ;;  %p617_p2 = scmp.lt.s32.totalorder %s611_s20, %s611_s20 }
   0x6   :  { %p618_p3 = por %p617_p2, %p616_p1 }
   0x8   :  { %p619_p4 = pnand %p618_p3, %p612_p0 }
   0xa   :  { %622 = shalt.err (!%p619_p4)
}
   0xb   :  { %s648_s21 = smov 64   ;;  %s649_s22 = smov 4  }
   0xc   :  { %29 = dma.hbm_to_vmem [thread:$0]  %s759_s3, 1024, %s24_s19, [#allocation3], %s648_s21, %s648_s21, %s649_s22  }
   0xd   :  { %643 = dma.done.wait [#allocation3], 1024  }
   0xe   :  { %644 = vsyncadd [#allocation3], 4294966272  ;;  %v585_v0 = vld [vmem:[%s757_s1 + $0x8] sm:$0xff]   ;;  %v586_v1 = vld [vmem:[%s757_s1] sm:$0xff]   ;;  %vm71_vm0 = vcmask 261120   ;;  %s650_s11 = smov [#allocation5]  }
   0xf   :  { %519 = vmatprep.subr.bf16.mxu0 %v585_v0  ;;  %v39_v2 = vld [vmem:[%s756_s0] sm:$0xff]  ;;  %v40_v3 = vld [vmem:[%s756_s0 + $0x8] sm:$0xff]  ;;  %v41_v5 = vld [vmem:[%s756_s0 + $0x10] sm:$0xff]  ;;  %s452_s12 = sshll.u32 %s650_s11, 4  ;;  %s453_s12 = int_to_ptr.vmem [resolvable:$true] %s452_s12 }
  0x10   :  { %520 = vmatpush3.bf16.msra.mxu0 %v585_v0  ;;  %v47_v4 = vpack.c.bf16 %v40_v3, %v39_v2  ;;  %v42_v6 = vld [vmem:[%s756_s0 + $0x18] sm:$0xff]  ;;  %v43_v7 = vld [vmem:[%s756_s0 + $0x20] sm:$0xff]  ;;  %v44_v8 = vld [vmem:[%s756_s0 + $0x28] sm:$0xff]  ;;  %p628_p6 = scmp.lt.s32.totalorder %s453_s12, %s453_s12 }
  0x11   :  { %521 = vmatprep.subr.bf16.mxu0 %v586_v1  ;;  %v587_v9 = vld [vmem:[%s758_s2 + $0x38] sm:$0xff]   ;;  %v48_v10 = vpack.c.bf16 %v42_v6, %v41_v5  ;;  %v588_v11 = vld [vmem:[%s758_s2 + $0x30] sm:$0xff]   ;;  %v49_v12 = vpack.c.bf16 %v44_v8, %v43_v7  ;;  %v589_v15 = vld [vmem:[%s758_s2 + $0x28] sm:$0xff]  }
  0x12   :  { %523 = vmatprep.mubr.msk.bf16.mxu0 %vm71_vm0, %v47_v4  ;;  %531 = vmatprep.subr.bf16.mxu1 %v587_v9  ;;  %v45_v13 = vld [vmem:[%s756_s0 + $0x30] sm:$0xff]  ;;  %v46_v14 = vld [vmem:[%s756_s0 + $0x38] sm:$0xff]  ;;  %v590_v16 = vld [vmem:[%s758_s2 + $0x20] sm:$0xff]  }
  0x13   :  { %532 = vmatpush3.bf16.msra.mxu1 %v587_v9  ;;  %v50_v17 = vpack.c.bf16 %v46_v14, %v45_v13  ;;  %v591_v18 = vld [vmem:[%s758_s2 + $0x18] sm:$0xff]   ;;  %v592_v19 = vld [vmem:[%s758_s2 + $0x10] sm:$0xff]   ;;  %v593_v20 = vld [vmem:[%s758_s2 + $0x8] sm:$0xff]  }
  0x14   :  { %522 = vmatpush3.bf16.msra.mxu0 %v586_v1  ;;  %533 = vmatprep.subr.bf16.mxu1 %v588_v11  ;;  %v594_v21 = vld [vmem:[%s758_s2] sm:$0xff]   ;;  %v595_v22 = vld [vmem:[#allocation2 + $0x38] sm:$0xff]   ;;  %v596_v23 = vld [vmem:[#allocation2 + $0x30] sm:$0xff]  }
  0x15   :  { %555 = vmatprep.subr.bf16.mxu0 %v595_v22  ;;  %v597_v24 = vld [vmem:[#allocation2 + $0x28] sm:$0xff]   ;;  %v598_v25 = vld [vmem:[#allocation2 + $0x20] sm:$0xff]   ;;  %v599_v26 = vld [vmem:[#allocation2 + $0x18] sm:$0xff]  }
  0x16   :  { %v464_v29 = vld [vmem:[%s760_s4] ss:$0 sm:$0xff]  ;;  %v600_v56 = vld [vmem:[#allocation2 + $0x10] sm:$0xff]   ;;  %v601_v57 = vld [vmem:[#allocation2 + $0x8] sm:$0xff]  }
  0x17   :  { %524 = vmatmul.mubr.msk.bf16.vlgmr.msra.gmra.mxu0 %vm71_vm0, %v48_v10  ;;  %534 = vmatpush3.bf16.msra.mxu1 %v588_v11  ;;  %v602_v58 = vld [vmem:[#allocation2] sm:$0xff]  }
  0x18   :  { %527 = vmatprep.mubr.msk.bf16.mxu0 %vm71_vm0, %v49_v12  ;;  %535 = vmatprep.subr.bf16.mxu1 %v589_v15  ;;  %v471_v61 = vld [vmem:[%s760_s4 + $0x1] ss:$0 sm:$0xff] }
  0x19   :  { %556 = vmatpush3.bf16.msra.mxu0 %v595_v22 }
  0x1a   :  { %557 = vmatprep.subr.bf16.mxu0 %v596_v23 }
  0x1b   :  { %536 = vmatpush3.bf16.msra.mxu1 %v589_v15 }
  0x1c   :  { %537 = vmatprep.subr.bf16.mxu1 %v590_v16 }
  0x1d   :  { %558 = vmatpush3.bf16.msra.mxu0 %v596_v23 }
  0x1e   :  { %559 = vmatprep.subr.bf16.mxu0 %v597_v24 }
  0x1f   :  { %528 = vmatmul.mubr.msk.bf16.gmra.mxu0 %vm71_vm0, %v50_v17  ;;  %538 = vmatpush3.bf16.msra.mxu1 %v590_v16 }
  0x20   :  { %539 = vmatprep.subr.bf16.mxu1 %v591_v18 }
  0x21   :  { %560 = vmatpush3.bf16.msra.mxu0 %v597_v24  ;;  %v480_v24 = vld [vmem:[%s760_s4 + $0x2] ss:$0 sm:$0xff]  ;;  %s623_s4 = scalar_lea.vmem %s453_s12, 1024 }
  0x22   :  { %561 = vmatprep.subr.bf16.mxu0 %v598_v25  ;;  %p624_p5 = scmp.ne.s32.totalorder %s453_s12, %s623_s4  ;;  %p629_p7 = scmp.lt.s32.totalorder %s623_s4, %s623_s4 }
  0x23   :  { %540 = vmatpush3.bf16.msra.mxu1 %v591_v18 }
  0x24   :  { %541 = vmatprep.subr.bf16.mxu1 %v592_v19  ;;  %p630_p8 = por %p629_p7, %p628_p6 }
  0x25   :  { %562 = vmatpush3.bf16.msra.mxu0 %v598_v25 }
  0x26   :  { %563 = vmatprep.subr.bf16.mxu0 %v599_v26  ;;  %p631_p9 = pnand %p630_p8, %p624_p5 }
  0x27   :  { %542 = vmatpush3.bf16.msra.mxu1 %v592_v19 }
  0x28   :  { %543 = vmatprep.subr.bf16.mxu1 %v593_v20 }
  0x29   :  { %564 = vmatpush3.bf16.msra.mxu0 %v599_v26 }
  0x2a   :  { %565 = vmatprep.subr.bf16.mxu0 %v600_v56 }
  0x2b   :  { %544 = vmatpush3.bf16.msra.mxu1 %v593_v20 }
  0x2c   :  { %545 = vmatprep.subr.bf16.mxu1 %v594_v21 }
  0x2d   :  { %566 = vmatpush3.bf16.msra.mxu0 %v600_v56 }
  0x2e   :  { %567 = vmatprep.subr.bf16.mxu0 %v601_v57 }
  0x2f   :  { %546 = vmatpush3.bf16.msra.mxu1 %v594_v21 }
  0x31   :  { %568 = vmatpush3.bf16.msra.mxu0 %v601_v57 }
  0x32   :  { %569 = vmatprep.subr.bf16.mxu0 %v602_v58 }
  0x35   :  { %570 = vmatpush3.bf16.msra.mxu0 %v602_v58 }
  0xd7   :  { %v525_v27 = vpop.f32.mrf.mxu0 }
  0xd8   :  { %v127_v33 = vadd.f32 %v525_v27, %v464_v29 }
  0xd9   :  { %v118_v28 = vpop.f32.mrf.mxu0 }
  0xda   :  { %v119_v31 = vadd.f32 %v464_v29, %v118_v28  ;;  %v151_v40 = vmax.f32 %v127_v33, 0.0 }
  0xdb   :  { %v526_v30 = vpop.f32.mrf.mxu0 }
  0xdc   :  { %v130_v32 = vadd.f32 %v526_v30, %v464_v29  ;;  %v149_v38 = vmax.f32 %v119_v31, 0.0 }
  0xdd   :  { %v121_v34 = vpop.f32.mrf.mxu0 }
  0xde   :  { %v122_v35 = vadd.f32 %v464_v29, %v121_v34  ;;  %v152_v36 = vmax.f32 %v130_v32, 0.0 }
  0xdf   :  { %v529_v37 = vpop.f32.mrf.mxu0 }
  0xe0   :  { %v150_v39 = vmax.f32 %v122_v35, 0.0  ;;  %v158_v43 = vpack.c.bf16 %v152_v36, %v151_v40  ;;  %v143_v47 = vadd.f32 %v529_v37, %v464_v29 }
  0xe1   :  { %v134_v41 = vpop.f32.mrf.mxu0 }
  0xe2   :  { %v157_v42 = vpack.c.bf16 %v150_v39, %v149_v38  ;;  %v135_v45 = vadd.f32 %v464_v29, %v134_v41  ;;  %v155_v53 = vmax.f32 %v143_v47, 0.0 }
  0xe3   :  { %v530_v44 = vpop.f32.mrf.mxu0 }
  0xe4   :  { %v146_v46 = vadd.f32 %v530_v44, %v464_v29  ;;  %547 = vmatprep.mubr.bf16.mxu1 %v157_v42  ;;  %v153_v51 = vmax.f32 %v135_v45, 0.0 }
  0xe5   :  { %v137_v48 = vpop.f32.mrf.mxu0  ;;  %548 = vmatmul.mubr.bf16.vlgmr.msra.gmra.mxu1 %v158_v43 }
  0xe6   :  { %v138_v49 = vadd.f32 %v464_v29, %v137_v48  ;;  %v156_v50 = vmax.f32 %v146_v46, 0.0 }
  0xe8   :  { %v154_v52 = vmax.f32 %v138_v49, 0.0  ;;  %v160_v55 = vpack.c.bf16 %v156_v50, %v155_v53 }
  0xea   :  { %v159_v54 = vpack.c.bf16 %v154_v52, %v153_v51 }
  0xec   :  { %551 = vmatprep.mubr.bf16.mxu1 %v159_v54 }
  0xed   :  { %552 = vmatmul.mubr.bf16.gmra.mxu1 %v160_v55 }
 0x1a5   :  { %v549_v59 = vpop.f32.mrf.mxu1 }
 0x1a6   :  { %v272_v1 = vadd.f32 %v549_v59, %v471_v61 }
 0x1a7   :  { %v263_v60 = vpop.f32.mrf.mxu1 }
 0x1a8   :  { %v264_v63 = vadd.f32 %v471_v61, %v263_v60  ;;  %v296_v8 = vmax.f32 %v272_v1, 0.0 }
 0x1a9   :  { %v550_v62 = vpop.f32.mrf.mxu1 }
 0x1aa   :  { %v275_v0 = vadd.f32 %v550_v62, %v471_v61  ;;  %v294_v6 = vmax.f32 %v264_v63, 0.0 }
 0x1ab   :  { %v266_v2 = vpop.f32.mrf.mxu1 }
 0x1ac   :  { %v267_v3 = vadd.f32 %v471_v61, %v266_v2  ;;  %v297_v4 = vmax.f32 %v275_v0, 0.0 }
 0x1ad   :  { %v553_v5 = vpop.f32.mrf.mxu1 }
 0x1ae   :  { %v295_v7 = vmax.f32 %v267_v3, 0.0  ;;  %v303_v11 = vpack.c.bf16 %v297_v4, %v296_v8  ;;  %v288_v15 = vadd.f32 %v553_v5, %v471_v61 }
 0x1af   :  { %v279_v9 = vpop.f32.mrf.mxu1 }
 0x1b0   :  { %v302_v10 = vpack.c.bf16 %v295_v7, %v294_v6  ;;  %v280_v13 = vadd.f32 %v471_v61, %v279_v9  ;;  %v300_v21 = vmax.f32 %v288_v15, 0.0 }
 0x1b1   :  { %v554_v12 = vpop.f32.mrf.mxu1 }
 0x1b2   :  { %v291_v14 = vadd.f32 %v554_v12, %v471_v61  ;;  %571 = vmatprep.mubr.bf16.mxu0 %v302_v10  ;;  %v298_v19 = vmax.f32 %v280_v13, 0.0 }
 0x1b3   :  { %v282_v16 = vpop.f32.mrf.mxu1  ;;  %572 = vmatmul.mubr.bf16.vlgmr.msra.gmra.mxu0 %v303_v11 }
 0x1b4   :  { %v283_v17 = vadd.f32 %v471_v61, %v282_v16  ;;  %v301_v18 = vmax.f32 %v291_v14, 0.0 }
 0x1b6   :  { %v299_v20 = vmax.f32 %v283_v17, 0.0  ;;  %v305_v23 = vpack.c.bf16 %v301_v18, %v300_v21 }
 0x1b8   :  { %v304_v22 = vpack.c.bf16 %v299_v20, %v298_v19 }
 0x1ba   :  { %575 = vmatprep.mubr.bf16.mxu0 %v304_v22 }
 0x1bb   :  { %576 = vmatmul.mubr.bf16.gmra.mxu0 %v305_v23 }
 0x273   :  { %v573_v25 = vpop.f32.mrf.mxu0 }
 0x274   :  { %v417_v26 = vadd.f32 %v573_v25, %v480_v24 }
 0x275   :  { %v408_v27 = vpop.f32.mrf.mxu0 }
 0x276   :  { %441 = vst [vmem:[#allocation5 + $0x10] sm:$0xff] %v417_v26  ;;  %v409_v28 = vadd.f32 %v480_v24, %v408_v27 }
 0x277   :  { %v574_v29 = vpop.f32.mrf.mxu0 }
 0x278   :  { %439 = vst [vmem:[#allocation5] sm:$0xff] %v409_v28  ;;  %v420_v30 = vadd.f32 %v574_v29, %v480_v24 }
 0x279   :  { %v411_v31 = vpop.f32.mrf.mxu0 }
 0x27a   :  { %442 = vst [vmem:[#allocation5 + $0x18] sm:$0xff] %v420_v30  ;;  %v412_v32 = vadd.f32 %v480_v24, %v411_v31 }
 0x27b   :  { %v577_v33 = vpop.f32.mrf.mxu0 }
 0x27c   :  { %440 = vst [vmem:[#allocation5 + $0x8] sm:$0xff] %v412_v32  ;;  %v433_v34 = vadd.f32 %v577_v33, %v480_v24 }
 0x27d   :  { %v424_v35 = vpop.f32.mrf.mxu0 }
 0x27e   :  { %445 = vst [vmem:[#allocation5 + $0x30] sm:$0xff] %v433_v34  ;;  %v425_v36 = vadd.f32 %v480_v24, %v424_v35 }
 0x27f   :  { %v578_v37 = vpop.f32.mrf.mxu0 }
 0x280   :  { %443 = vst [vmem:[#allocation5 + $0x20] sm:$0xff] %v425_v36  ;;  %v436_v38 = vadd.f32 %v578_v37, %v480_v24 }
 0x281   :  { %v427_v39 = vpop.f32.mrf.mxu0 }
 0x282   :  { %446 = vst [vmem:[#allocation5 + $0x38] sm:$0xff] %v436_v38  ;;  %v428_v40 = vadd.f32 %v480_v24, %v427_v39 }
 0x284   :  { %444 = vst [vmem:[#allocation5 + $0x28] sm:$0xff] %v428_v40 }
 0x285   :  { %634 = shalt.err (!%p631_p9)
}
 0x286   :  { %s651_s13 = smov 128   ;;  %s652_s14 = smov 8  }
 0x287   :  { %458 = dma.vmem_to_hbm [thread:$0]  %s453_s12, 1024, %s761_s5, [#allocation4], %s651_s13, %s651_s13, %s652_s14  }
 0x288   :  { %645 = dma.done.wait [#allocation4], 1024  }
 0x289   :  { %646 = vsyncadd [#allocation4], 4294966272 }
 0x28a   :  { %462 = vsyncpa [#allocation3], 1 }
 0x28b   :  { %463 = vsyncpa [#allocation4], 1 }

</bundles_post_ra>
